<compile_context>
chip_gen: v5e
topology: v5e:2x2
jax: 0.10.0
libtpu: 0.0.40
codegen_flags: <defaults>
</compile_context>

<pallas_src>
import functools

import jax
import jax.numpy as jnp
from jax.experimental import pallas as pl
from jax.experimental.pallas import tpu as pltpu

LANE = 128  # lane width / MXU tile width


def _round_up(v, m):
    return ((v + m - 1) // m) * m


def _sublane(dtype):
    # Rows per vreg tile: 8 for 32-bit, 16 for 16-bit, 32 for 8-bit dtypes.
    return max(8, 32 // jnp.dtype(dtype).itemsize)


def _choose_batch_tile(B, block_b, sub):
    """Pick TB (multiple of `sub`) so tiles are big, balanced, and >=2 when possible."""
    b_ceil = _round_up(B, sub)
    n_tiles = pl.cdiv(b_ceil, block_b)
    if n_tiles == 1 and b_ceil >= 2 * sub:
        # v7x has 2 TensorCores; a 1-step grid would leave one idle.
        n_tiles = 2
    return _round_up(pl.cdiv(b_ceil, n_tiles), sub)


def _linear_kernel(x_ref, wt_ref, b_ref, o_ref):
    # x_ref: (TB, K)   wt_ref: (K, N_pad)   b_ref: (1, N)   o_ref: (TB, N)
    n = o_ref.shape[-1]
    acc = jnp.dot(x_ref[...], wt_ref[...], preferred_element_type=jnp.float32)
    # Store only the useful lanes (narrow output); bias add on the narrow slab.
    o_ref[...] = (acc[:, :n] + b_ref[...]).astype(o_ref.dtype)


@functools.partial(jax.jit, static_argnames=("block_b",))
def linear_classifier(x, weight, bias, *, block_b=1024):
    """y = x @ weight.T + bias

    x:      [B, input_dim]            (f32 or bf16)
    weight: [output_dim, input_dim]   (PyTorch nn.Linear layout)
    bias:   [output_dim]
    returns [B, output_dim]           (same dtype as x)
    """
    B, K = x.shape
    N = weight.shape[0]
    dt = x.dtype

    # Only the tiny resident weight gets lane-dense padding along N.
    N_pad = _round_up(N, LANE)
    wt_p = jnp.zeros((K, N_pad), dt).at[:, :N].set(weight.T.astype(dt))
    b_p = bias.astype(jnp.float32).reshape(1, N)

    sub = _sublane(dt)
    TB = _choose_batch_tile(B, block_b, sub)
    grid = (pl.cdiv(B, TB),)

    itemsize = jnp.dtype(dt).itemsize
    cost = pl.CostEstimate(
        flops=2 * B * K * N + B * N,
        transcendentals=0,
        bytes_accessed=(B * K + K * N + N + B * N) * itemsize,
    )

    out = pl.pallas_call(
        _linear_kernel,
        out_shape=jax.ShapeDtypeStruct((B, N), dt),
        grid_spec=pltpu.PrefetchScalarGridSpec(
            num_scalar_prefetch=0,
            grid=grid,
            in_specs=[
                # x: tiled over batch, unpadded K (= full last dim -> legal block).
                pl.BlockSpec((TB, K), lambda i: (i, 0)),
                # W^T: constant block index -> stays resident in VMEM.
                pl.BlockSpec((K, N_pad), lambda i: (0, 0)),
                # bias: constant block index -> resident, no per-tile DMA.
                pl.BlockSpec((1, N), lambda i: (0, 0)),
            ],
            # Narrow output: only N lanes per row ever hit HBM.
            out_specs=pl.BlockSpec((TB, N), lambda i: (i, 0)),
        ),
        compiler_params=pltpu.CompilerParams(
            dimension_semantics=("parallel",),
        ),
        cost_estimate=cost,
    )(x, wt_p, b_p)

    return out


if __name__ == "__main__":
    input_dim = 50
    output_dim = 2
    batch = 2

    key = jax.random.PRNGKey(0)
    kx, kw, kb, kx2 = jax.random.split(key, 4)

    # Deterministic parameter init mimicking torch.nn.Linear default:
    # U(-1/sqrt(fan_in), 1/sqrt(fan_in))
    bound = 1.0 / (input_dim ** 0.5)
    weight = jax.random.uniform(
        kw, (output_dim, input_dim), dtype=jnp.float32, minval=-bound, maxval=bound
    )
    bias = jax.random.uniform(
        kb, (output_dim,), dtype=jnp.float32, minval=-bound, maxval=bound
    )

    # Small shape matching the module's usage (single/few samples of dim 50).
    x = jax.random.normal(kx, (batch, input_dim), dtype=jnp.float32)
    y = linear_classifier(x, weight, bias)
    jax.block_until_ready(y)
    y_ref = x @ weight.T + bias
    assert y.shape == (batch, output_dim)
    assert jnp.allclose(y, y_ref, atol=1e-5, rtol=1e-5)

    # Also exercise the multi-tile (grid > 1) + ragged-batch path.
    x2 = jax.random.normal(kx2, (300, input_dim), dtype=jnp.float32)
    y2 = linear_classifier(x2, weight, bias, block_b=128)
    jax.block_until_ready(y2)
    y2_ref = x2 @ weight.T + bias
    assert y2.shape == (300, output_dim)
    assert jnp.allclose(y2, y2_ref, atol=1e-5, rtol=1e-5)

    print("KERNEL_OK")
</pallas_src>

<mosaic_0001>
module attributes {stable_mosaic.version = 11 : i64} {
  func.func @_linear_kernel(%arg0: i32, %arg1: memref<8x50xf32, #tpu.memory_space<vmem>>, %arg2: memref<50x128xf32, #tpu.memory_space<vmem>>, %arg3: memref<1x2xf32, #tpu.memory_space<vmem>>, %arg4: memref<8x2xf32, #tpu.memory_space<vmem>>) attributes {dimension_semantics = [#tpu.dimension_semantics<parallel>], iteration_bounds = array<i64: 1>, scalar_prefetch = 0 : i64, scratch_operands = 0 : i64, tpu.core_type = #tpu.core_type<tc>, window_params = [{transform_indices = @transform_0, window_bounds = array<i64: 8, 50>}, {pipeline_mode = #tpu.pipeline_mode<synchronous>, transform_indices = @transform_1, window_bounds = array<i64: 50, 128>}, {pipeline_mode = #tpu.pipeline_mode<synchronous>, transform_indices = @transform_2, window_bounds = array<i64: 1, 2>}, {transform_indices = @transform_3, window_bounds = array<i64: 8, 2>}]} {
    %c0 = arith.constant 0 : index
    %c0_0 = arith.constant 0 : index
    %0 = vector.load %arg1[%c0, %c0_0] : memref<8x50xf32, #tpu.memory_space<vmem>>, vector<8x50xf32>
    %c0_1 = arith.constant 0 : index
    %c0_2 = arith.constant 0 : index
    %1 = vector.load %arg2[%c0_1, %c0_2] : memref<50x128xf32, #tpu.memory_space<vmem>>, vector<50x128xf32>
    %cst = arith.constant dense<0.000000e+00> : vector<8x128xf32>
    %2 = tpu.matmul %0, %1, %cst {dimension_numbers = #tpu.dot_dimension_numbers<[1], [0], [0], [1], [0, 0, 1, 1], [], []>} : vector<8x50xf32>, vector<50x128xf32>, vector<8x128xf32> -> vector<8x128xf32>
    %3 = vector.extract_strided_slice %2 {offsets = [0, 0], sizes = [8, 2], strides = [1, 1]} : vector<8x128xf32> to vector<8x2xf32>
    %c0_3 = arith.constant 0 : index
    %c0_4 = arith.constant 0 : index
    %4 = vector.load %arg3[%c0_3, %c0_4] : memref<1x2xf32, #tpu.memory_space<vmem>>, vector<1x2xf32>
    %5 = vector.broadcast %4 : vector<1x2xf32> to vector<8x2xf32>
    %6 = arith.addf %3, %5 : vector<8x2xf32>
    %c0_5 = arith.constant 0 : index
    %c0_6 = arith.constant 0 : index
    %7 = vector.load %arg4[%c0_5, %c0_6] : memref<8x2xf32, #tpu.memory_space<vmem>>, vector<8x2xf32>
    tpu.vector_store %arg4[%c0_5, %c0_6], %6 {strides = array<i32>} : memref<8x2xf32, #tpu.memory_space<vmem>>, vector<8x2xf32>,
    return
  }
  func.func @transform_0(%arg0: i32) -> (i32, i32) {
    %c0_i32 = arith.constant 0 : i32
    %c0_i32_0 = arith.constant 0 : i32
    return %arg0, %c0_i32 : i32, i32
  }
  func.func @transform_1(%arg0: i32) -> (i32, i32) {
    %c0_i32 = arith.constant 0 : i32
    %c0_i32_0 = arith.constant 0 : i32
    %c0_i32_1 = arith.constant 0 : i32
    return %c0_i32, %c0_i32_0 : i32, i32
  }
  func.func @transform_2(%arg0: i32) -> (i32, i32) {
    %c0_i32 = arith.constant 0 : i32
    %c0_i32_0 = arith.constant 0 : i32
    %c0_i32_1 = arith.constant 0 : i32
    return %c0_i32, %c0_i32_0 : i32, i32
  }
  func.func @transform_3(%arg0: i32) -> (i32, i32) {
    %c0_i32 = arith.constant 0 : i32
    %c0_i32_0 = arith.constant 0 : i32
    return %arg0, %c0_i32 : i32, i32
  }
}

</mosaic_0001>

<bundles_post_ra>
// kernel: linear_classifier.1
= control target key start
LH: loop header
LB: loop body
LE: loop exit
PB: predicated region body
PF: predicated region fallthrough
CT: control target
= control target key end

     0   :  { %8 = vsyncpa [#allocation3], 0  ;;  %vm27_vm0 = vcmask 1041408   ;;  %vm23_vm1 = vcmask 408576   ;;  %vm56_vm2 = vcmask 15360   ;;  %s161_s0 = inlined_call_operand.vmem [shape: f32[2,50], index: 0, kind: input, shape index: {}]   ;;  %s162_s1 = inlined_call_operand.vmem [shape: f32[50,128], index: 1, kind: input, shape index: {}]   ;;  %s163_s2 = inlined_call_operand.vmem [shape: f32[1,2], index: 2, kind: input, shape index: {}]   ;;  %s164_s3 = inlined_call_operand.hbm [shape: f32[2,2], index: 3, kind: output, shape index: {}]  }
   0x1   :  { %v22_v0 = vld [vmem:[%s162_s1 + $0x30] sm:$0x3]  ;;  %v21_v1 = vld [vmem:[%s162_s1 + $0x28] sm:$0xff]  ;;  %v20_v2 = vld [vmem:[%s162_s1 + $0x20] sm:$0xff] }
   0x2   :  { %76 = vmatpush.msk.msra.mxu0 %vm27_vm0, %v22_v0  ;;  %v19_v3 = vld [vmem:[%s162_s1 + $0x18] sm:$0xff]  ;;  %v18_v4 = vld [vmem:[%s162_s1 + $0x10] sm:$0xff]  ;;  %v17_v5 = vld [vmem:[%s162_s1 + $0x8] sm:$0xff] }
   0x3   :  { %v16_v6 = vld [vmem:[%s162_s1] sm:$0xff] }
   0x4   :  { %41 = vmatpush.msra.mxu0 %v21_v1  ;;  %v15_v7 = vld [vmem:[%s161_s0] sm:$0xff] }
   0x5   :  { %v81_v8 = vld [vmem:[%s163_s2] ss:$0 sm:$0xff] }
   0x6   :  { %42 = vmatpush.msra.mxu0 %v20_v2 }
   0x8   :  { %43 = vmatpush.msra.mxu0 %v19_v3 }
   0xa   :  { %44 = vmatpush.msra.mxu0 %v18_v4 }
   0xc   :  { %45 = vmatpush.msra.mxu0 %v17_v5 }
   0xe   :  { %46 = vmatpush.msra.mxu0 %v16_v6 }
   0xf   :  { %77 = vmatmul.msk.f32.vlgmr.msra.gmra.mxu0 %vm23_vm1, %v15_v7 }
  0x8c   :  { %v48_v9 = vpop.f32.mrf.mxu0 }
  0x8d   :  { %v55_v10 = vadd.f32 %v81_v8, %v48_v9 }
  0x8f   :  { %57 = vst.msk [vmem:[#allocation2] sm:$0xff] %vm56_vm2, %v55_v10 }
  0x90   :  { %61 = vsyncadd [#allocation3], 96  ;;  %s64_s1 = sshll.u32 %s164_s3, 4  ;;  %s108_s5 = smov [#allocation2]   ;;  %s65_s1 = int_to_ptr.hbm [resolvable:$true] %s64_s1 }
  0x91   :  { %s62_s6 = sshll.u32 %s108_s5, 4  ;;  %s109_s0 = smov 32   ;;  %s63_s6 = int_to_ptr.vmem [resolvable:$true] %s62_s6 }
  0x92   :  { %s110_s7 = smov 2  }
  0x93   :  { %70 = dma.vmem_to_hbm [thread:$0]  %s63_s6, 32, %s65_s1, [#allocation3], %s109_s0, %s109_s0, %s110_s7  }
  0x94   :  { %106 = dma.done.wait [#allocation3], 128  }
  0x95   :  { %107 = vsyncadd [#allocation3], 4294967168 }
  0x96   :  { %75 = vsyncpa [#allocation3], 1 }

</bundles_post_ra>
